<compile_context>
chip_gen: v7x
topology: tpu7x:2x2x1
jax: 0.10.0
libtpu: 0.0.40
codegen_flags: <defaults>
</compile_context>

<pallas_src>
import functools

import jax
import jax.numpy as jnp
from jax.experimental import pallas as pl
from jax.experimental.pallas import tpu as pltpu

OUT_PAD = 128    # fc2 padded to a full 128-lane width -> exact 128-lane softmax
PROBS_OFF = 64   # lane offset of probs inside the packed (TB, 128) output row
NEG_BIG = -1e30  # bias for padded logit lanes -> exp underflows to exactly 0


def _round_up(x, m):
    return ((x + m - 1) // m) * m


def irisnet_kernel(x_ref, w1_ref, b1_ref, w2_ref, b2_ref, packed_ref):
    # fc1: [TB, IN] @ [IN, Hp] + [1, Hp]
    x = x_ref[...]
    h = jnp.dot(x, w1_ref[...], preferred_element_type=jnp.float32) + b1_ref[...]
    # ReQU: relu(x) * relu(x)
    h = jnp.maximum(h, 0.0)
    h = h * h
    # fc2 (padded to 128 output lanes): [TB, Hp] @ [Hp, 128] + [1, 128]
    logits = jnp.dot(h, w2_ref[...], preferred_element_type=jnp.float32) + b2_ref[...]
    # Numerically-stable softmax over the full 128 lanes; padded lanes carry a
    # -1e30 bias so their exps are exactly 0 and do not pollute the denominator.
    m = jnp.max(logits, axis=-1, keepdims=True)
    e = jnp.exp(logits - m)
    denom = jnp.sum(e, axis=-1, keepdims=True)
    probs = e / denom  # exact divide: probs sum to 1 to f32 precision
    # Pack into ONE lane-dense (TB, 128) row and do a single unmasked store:
    #   lanes [0, 64)    : logits  (real values in [0, OUT), -1e30 sentinels after)
    #   lanes [64, 128)  : probs   (real values in [64, 64+OUT), exact zeros after)
    packed_ref[...] = jnp.concatenate(
        [logits[:, :PROBS_OFF], probs[:, :PROBS_OFF]], axis=-1
    ).astype(packed_ref.dtype)


def irisnet_packed(x, w1, b1, w2, b2, block_batch=2048):
    """Runs the fused kernel; returns the packed (Bp, 128) f32 slab."""
    B, IN = x.shape
    H = w1.shape[1]
    OUT = w2.shape[1]
    assert OUT <= PROBS_OFF

    # Pad hidden dim to a sublane-aligned width (exact: ReQU(0) = 0, padded
    # w2 rows are 0), and pad fc2 out to 128 lanes (-1e30 bias on pad lanes).
    Hp = _round_up(H, 8)
    w1p = jnp.zeros((IN, Hp), w1.dtype).at[:, :H].set(w1)
    b1p = jnp.zeros((1, Hp), b1.dtype).at[:, :H].set(b1.reshape(1, H))
    w2p = jnp.zeros((Hp, OUT_PAD), w2.dtype).at[:H, :OUT].set(w2)
    b2p = jnp.full((1, OUT_PAD), NEG_BIG, b2.dtype).at[:, :OUT].set(b2.reshape(1, OUT))

    # Batch tile: big (amortize per-step grid overhead), multiple of 8, but
    # keep >= 2 grid steps whenever the batch allows it so the "parallel"
    # batch axis can shard across both v7x TensorCores.
    Bp8 = _round_up(B, 8)
    tb = min(_round_up(int(block_batch), 8), Bp8)
    half = _round_up(pl.cdiv(Bp8, 2), 8)
    if Bp8 >= 16 and tb > half:
        tb = half
    Bp = _round_up(B, tb)
    xp = x if Bp == B else jnp.pad(x, ((0, Bp - B), (0, 0)))

    grid = (Bp // tb,)

    # Cost estimate reflects the shrunken 128-lane output slab.
    flops = 2 * Bp * (IN * Hp + Hp * OUT_PAD) + 4 * Bp * Hp
    bytes_accessed = 4 * (Bp * IN + IN * Hp + Hp + Hp * OUT_PAD + OUT_PAD
                          + Bp * OUT_PAD)
    cost = pl.CostEstimate(flops=flops,
                           transcendentals=Bp * OUT_PAD,
                           bytes_accessed=bytes_accessed)

    packed = pl.pallas_call(
        irisnet_kernel,
        grid=grid,
        in_specs=[
            pl.BlockSpec((tb, IN), lambda i: (i, 0)),       # x: tiled over batch
            pl.BlockSpec((IN, Hp), lambda i: (0, 0)),        # w1: resident in VMEM
            pl.BlockSpec((1, Hp), lambda i: (0, 0)),         # b1: resident
            pl.BlockSpec((Hp, OUT_PAD), lambda i: (0, 0)),   # w2 (padded): resident
            pl.BlockSpec((1, OUT_PAD), lambda i: (0, 0)),    # b2 (padded): resident
        ],
        out_specs=pl.BlockSpec((tb, OUT_PAD), lambda i: (i, 0)),
        out_shape=jax.ShapeDtypeStruct((Bp, OUT_PAD), jnp.float32),
        compiler_params=pltpu.CompilerParams(
            dimension_semantics=("parallel",),
        ),
        cost_estimate=cost,
    )(xp, w1p, b1p, w2p, b2p)
    return packed


@functools.partial(jax.jit, static_argnames=("block_batch",))
def irisnet_forward(x, w1, b1, w2, b2, block_batch=2048):
    """Returns (out_logits, probs) with the original [B, OUT] shapes."""
    B = x.shape[0]
    OUT = w2.shape[1]
    packed = irisnet_packed(x, w1, b1, w2, b2, block_batch=block_batch)
    out = packed[:B, :OUT]
    probs = packed[:B, PROBS_OFF:PROBS_OFF + OUT]
    return out, probs


def init_params(key, insize=4, hsize=10, outsize=3):
    # Deterministic init mimicking PyTorch nn.Linear default
    # (U[-1/sqrt(fan_in), +1/sqrt(fan_in)]).
    k1, k2, k3, k4 = jax.random.split(key, 4)
    bound1 = 1.0 / jnp.sqrt(insize)
    bound2 = 1.0 / jnp.sqrt(hsize)
    # stored as [in, out] (transposed vs. PyTorch's [out, in])
    w1 = jax.random.uniform(k1, (insize, hsize), jnp.float32, -bound1, bound1)
    b1 = jax.random.uniform(k2, (1, hsize), jnp.float32, -bound1, bound1)
    w2 = jax.random.uniform(k3, (hsize, outsize), jnp.float32, -bound2, bound2)
    b2 = jax.random.uniform(k4, (1, outsize), jnp.float32, -bound2, bound2)
    return w1, b1, w2, b2


def reference_forward(x, w1, b1, w2, b2):
    h = x @ w1 + b1
    h = jnp.maximum(h, 0.0) ** 2
    out = h @ w2 + b2
    probs = jax.nn.softmax(out, axis=-1)
    return out, probs


if __name__ == "__main__":
    key = jax.random.PRNGKey(0)
    kx, kp = jax.random.split(key)

    B, INSIZE, HSIZE, OUTSIZE = 64, 4, 10, 3
    x = jax.random.normal(kx, (B, INSIZE), jnp.float32)
    w1, b1, w2, b2 = init_params(kp, INSIZE, HSIZE, OUTSIZE)

    out_ref, probs_ref = reference_forward(x, w1, b1, w2, b2)

    # Small explicit tile -> 4 grid steps, exercises the batch-tiled pipeline.
    out, probs = irisnet_forward(x, w1, b1, w2, b2, block_batch=16)
    out = jax.block_until_ready(out)
    probs = jax.block_until_ready(probs)
    assert out.shape == (B, OUTSIZE) and probs.shape == (B, OUTSIZE)
    assert jnp.allclose(out, out_ref, atol=1e-5, rtol=1e-5)
    assert jnp.allclose(probs, probs_ref, atol=1e-5, rtol=1e-5)
    assert jnp.allclose(jnp.sum(probs, axis=-1), 1.0, atol=1e-5)

    # Default (large) tile: capped so the grid still has >= 2 steps (v7x).
    out2, probs2 = irisnet_forward(x, w1, b1, w2, b2)
    out2 = jax.block_until_ready(out2)
    probs2 = jax.block_until_ready(probs2)
    assert jnp.allclose(out2, out_ref, atol=1e-5, rtol=1e-5)
    assert jnp.allclose(probs2, probs_ref, atol=1e-5, rtol=1e-5)
    assert jnp.allclose(jnp.sum(probs2, axis=-1), 1.0, atol=1e-5)

    print("KERNEL_OK")
</pallas_src>

<mosaic_0001>
module attributes {stable_mosaic.version = 11 : i64} {
  func.func @irisnet_kernel(%arg0: i32, %arg1: memref<16x4xf32, #tpu.memory_space<vmem>>, %arg2: memref<4x16xf32, #tpu.memory_space<vmem>>, %arg3: memref<1x16xf32, #tpu.memory_space<vmem>>, %arg4: memref<16x128xf32, #tpu.memory_space<vmem>>, %arg5: memref<1x128xf32, #tpu.memory_space<vmem>>, %arg6: memref<16x128xf32, #tpu.memory_space<vmem>>) attributes {dimension_semantics = [#tpu.dimension_semantics<parallel>], iteration_bounds = array<i64: 4>, scalar_prefetch = 0 : i64, scratch_operands = 0 : i64, tpu.core_type = #tpu.core_type<tc>, window_params = [{transform_indices = @transform_0, window_bounds = array<i64: 16, 4>}, {pipeline_mode = #tpu.pipeline_mode<synchronous>, transform_indices = @transform_1, window_bounds = array<i64: 4, 16>}, {pipeline_mode = #tpu.pipeline_mode<synchronous>, transform_indices = @transform_2, window_bounds = array<i64: 1, 16>}, {pipeline_mode = #tpu.pipeline_mode<synchronous>, transform_indices = @transform_3, window_bounds = array<i64: 16, 128>}, {pipeline_mode = #tpu.pipeline_mode<synchronous>, transform_indices = @transform_4, window_bounds = array<i64: 1, 128>}, {transform_indices = @transform_5, window_bounds = array<i64: 16, 128>}]} {
    %c0 = arith.constant 0 : index
    %c0_0 = arith.constant 0 : index
    %0 = vector.load %arg1[%c0, %c0_0] : memref<16x4xf32, #tpu.memory_space<vmem>>, vector<16x4xf32>
    %c0_1 = arith.constant 0 : index
    %c0_2 = arith.constant 0 : index
    %1 = vector.load %arg2[%c0_1, %c0_2] : memref<4x16xf32, #tpu.memory_space<vmem>>, vector<4x16xf32>
    %cst = arith.constant dense<0.000000e+00> : vector<16x16xf32>
    %2 = tpu.matmul %0, %1, %cst {dimension_numbers = #tpu.dot_dimension_numbers<[1], [0], [0], [1], [0, 0, 1, 1], [], []>} : vector<16x4xf32>, vector<4x16xf32>, vector<16x16xf32> -> vector<16x16xf32>
    %c0_3 = arith.constant 0 : index
    %c0_4 = arith.constant 0 : index
    %3 = vector.load %arg3[%c0_3, %c0_4] : memref<1x16xf32, #tpu.memory_space<vmem>>, vector<1x16xf32>
    %4 = vector.broadcast %3 : vector<1x16xf32> to vector<16x16xf32>
    %5 = arith.addf %2, %4 : vector<16x16xf32>
    %cst_5 = arith.constant 0.000000e+00 : f32
    %6 = vector.broadcast %cst_5 : f32 to vector<16x16xf32>
    %7 = arith.maximumf %5, %6 : vector<16x16xf32>
    %8 = arith.mulf %7, %7 : vector<16x16xf32>
    %c0_6 = arith.constant 0 : index
    %c0_7 = arith.constant 0 : index
    %9 = vector.load %arg4[%c0_6, %c0_7] : memref<16x128xf32, #tpu.memory_space<vmem>>, vector<16x128xf32>
    %cst_8 = arith.constant dense<0.000000e+00> : vector<16x128xf32>
    %10 = tpu.matmul %8, %9, %cst_8 {dimension_numbers = #tpu.dot_dimension_numbers<[1], [0], [0], [1], [0, 0, 1, 1], [], []>} : vector<16x16xf32>, vector<16x128xf32>, vector<16x128xf32> -> vector<16x128xf32>
    %c0_9 = arith.constant 0 : index
    %c0_10 = arith.constant 0 : index
    %11 = vector.load %arg5[%c0_9, %c0_10] : memref<1x128xf32, #tpu.memory_space<vmem>>, vector<1x128xf32>
    %12 = vector.broadcast %11 : vector<1x128xf32> to vector<16x128xf32>
    %13 = arith.addf %10, %12 : vector<16x128xf32>
    %cst_11 = arith.constant dense<0xFF800000> : vector<16xf32>
    %14 = vector.multi_reduction <maximumf>, %13, %cst_11 [1] : vector<16x128xf32> to vector<16xf32>
    %15 = vector.shape_cast %14 : vector<16xf32> to vector<16x1xf32>
    %16 = vector.broadcast %15 : vector<16x1xf32> to vector<16x128xf32>
    %17 = arith.subf %13, %16 : vector<16x128xf32>
    %18 = math.exp %17 : vector<16x128xf32>
    %cst_12 = arith.constant dense<0.000000e+00> : vector<16xf32>
    %19 = vector.multi_reduction <add>, %18, %cst_12 [1] : vector<16x128xf32> to vector<16xf32>
    %20 = vector.shape_cast %19 : vector<16xf32> to vector<16x1xf32>
    %21 = vector.broadcast %20 : vector<16x1xf32> to vector<16x128xf32>
    %22 = arith.divf %18, %21 : vector<16x128xf32>
    %23 = vector.extract_strided_slice %13 {offsets = [0, 0], sizes = [16, 64], strides = [1, 1]} : vector<16x128xf32> to vector<16x64xf32>
    %24 = vector.extract_strided_slice %22 {offsets = [0, 0], sizes = [16, 64], strides = [1, 1]} : vector<16x128xf32> to vector<16x64xf32>
    %25 = tpu.concatenate %23, %24 in 1 : vector<16x64xf32>, vector<16x64xf32> -> vector<16x128xf32>
    %c0_13 = arith.constant 0 : index
    %c0_14 = arith.constant 0 : index
    %26 = vector.load %arg6[%c0_13, %c0_14] : memref<16x128xf32, #tpu.memory_space<vmem>>, vector<16x128xf32>
    tpu.vector_store %arg6[%c0_13, %c0_14], %25 {strides = array<i32>} : memref<16x128xf32, #tpu.memory_space<vmem>>, vector<16x128xf32>,
    return
  }
  func.func @transform_0(%arg0: i32) -> (i32, i32) {
    %c0_i32 = arith.constant 0 : i32
    %c0_i32_0 = arith.constant 0 : i32
    return %arg0, %c0_i32 : i32, i32
  }
  func.func @transform_1(%arg0: i32) -> (i32, i32) {
    %c0_i32 = arith.constant 0 : i32
    %c0_i32_0 = arith.constant 0 : i32
    %c0_i32_1 = arith.constant 0 : i32
    return %c0_i32, %c0_i32_0 : i32, i32
  }
  func.func @transform_2(%arg0: i32) -> (i32, i32) {
    %c0_i32 = arith.constant 0 : i32
    %c0_i32_0 = arith.constant 0 : i32
    %c0_i32_1 = arith.constant 0 : i32
    return %c0_i32, %c0_i32_0 : i32, i32
  }
  func.func @transform_3(%arg0: i32) -> (i32, i32) {
    %c0_i32 = arith.constant 0 : i32
    %c0_i32_0 = arith.constant 0 : i32
    %c0_i32_1 = arith.constant 0 : i32
    return %c0_i32, %c0_i32_0 : i32, i32
  }
  func.func @transform_4(%arg0: i32) -> (i32, i32) {
    %c0_i32 = arith.constant 0 : i32
    %c0_i32_0 = arith.constant 0 : i32
    %c0_i32_1 = arith.constant 0 : i32
    return %c0_i32, %c0_i32_0 : i32, i32
  }
  func.func @transform_5(%arg0: i32) -> (i32, i32) {
    %c0_i32 = arith.constant 0 : i32
    %c0_i32_0 = arith.constant 0 : i32
    return %arg0, %c0_i32 : i32, i32
  }
}

</mosaic_0001>

<bundles_post_ra>
// kernel: irisnet_forward.1
= control target key start
LH: loop header
LB: loop body
LE: loop exit
PB: predicated region body
PF: predicated region fallthrough
CT: control target
= control target key end

     0   :  { %s603_s18 = smov 0   ;;  %s642_s0 = inlined_call_operand.vmem [shape: f32[64,4], index: 0, kind: input, shape index: {}]   ;;  %s643_s1 = inlined_call_operand.vmem [shape: f32[4,16], index: 1, kind: input, shape index: {}]   ;;  %s644_s2 = inlined_call_operand.vmem [shape: f32[1,16], index: 2, kind: input, shape index: {}]   ;;  %s645_s3 = inlined_call_operand.vmem [shape: f32[16,128], index: 3, kind: input, shape index: {}]   ;;  %s646_s4 = inlined_call_operand.vmem [shape: f32[1,128], index: 4, kind: input, shape index: {}]   ;;  %s647_s5 = inlined_call_operand.vmem [shape: f32[64,128], index: 5, kind: output, shape index: {}]  }
   0x1 LB: > { %s506_s19 = sadd.s32 4294967295, %s570_s18   ;;  %p510_p0 = scmp.ge.s32.totalorder %s570_s18, 1  ;;  %s570_s18 = sphi %s603_s18, %s15_s18  }
   0x2   : > { %p188_p1 = scmp.lt.s32.totalorder %s570_s18, 5 }
   0x4   : > { %p189_p2 = pnand %p510_p0, %p188_p1 }
   0x5   : > { %v230_v0 = vld [vmem:[%s643_s1] sm:$0xf] (!%p189_p2)  ;;  %vm245_vm0 = vcmask (!%p189_p2), 1043456   ;;  %s511_s22 = sshll.u32 (!%p189_p2), %s506_s19, 1  ;;  %vm238_vm1 = vcmask (!%p189_p2), 31744   ;;  %v329_v4 = vld [vmem:[%s645_s3 + $0x8] sm:$0xff] (!%p189_p2) }
   0x6   : > { %192 = sbr.rel (%p189_p2) target bundleno = 886 (0x376), region = 40  ;;  %531 = vmatprep.subr.msk.mxu0 (!%p189_p2), %vm245_vm0, %v230_v0  ;;  %p217_p3 = scmp.lt.s32.totalorder (!%p189_p2), %s511_s22, 7  ;;  %v328_v3 = vld [vmem:[%s645_s3] sm:$0xff] (!%p189_p2)  ;;  %vm337_vm2 = vcmask (!%p189_p2), 130048   ;;  %vm445_vm3 = vcmask (!%p189_p2), 523264  }
   0x7   : > { %532 = vmatpush3.msk.msra.mxu0 (!%p189_p2), %vm245_vm0, %v230_v0  ;;  %v543_v5 = vpack.c.bf16 (!%p189_p2), %v329_v4, %v328_v3  ;;  %v515_v6 = vld [vmem:[%s644_s2] ss:$0 sm:$0xff] (!%p189_p2)  ;;  %s572_s10 = smov (!%p189_p2), 64  }
   0x8   : > { %v519_v15 = vld [vmem:[%s646_s4] ss:$0 sm:$0xff] (!%p189_p2) }
   0x9   : > { %544 = vmatprep.subr.bf16.mxu1 (!%p189_p2), %v543_v5 }
   0xa   : > { %546 = vmatpush3.bf16.msra.mxu1 (!%p189_p2), %v543_v5 }
   0xd   : > { %s649_s22 = smov (!%p217_p3, %s511_s22), 7 }
   0xe   : > { %s512_s23 = sshll.u32 %s649_s22, 3 }
   0xf   : > { %s220_s26 = scalar_lea.vmem %s642_s0, %s512_s23  ;;  %s226_s13 = scalar_lea.vmem %s647_s5, %s512_s23 }
  0x10   : > { %v228_v1 = vld [vmem:[%s220_s26] sm:$0xff]  ;;  %v229_v2 = vld [vmem:[%s220_s26 + $0x8] sm:$0xff] }
  0x11   : > { %533 = vmatprep.mubr.msk.f32.mxu0 %vm238_vm1, %v228_v1 }
  0x12   : > { %534 = vmatmul.mubr.msk.f32.vlgmr.msra.gmra.mrb[0].mxu0 %vm238_vm1, %v229_v2 }
  0xe5   : > { %v535_v7 = vpop.f32.mrb[0].mxu0 }
  0xe6   : > { %v321_v8 = vadd.f32 %v535_v7, %v515_v6  ;;  %v315_v9 = vpop.f32.mrb[1].mxu0 }
  0xe7   : > { %v316_v10 = vadd.f32 %v515_v6, %v315_v9 }
  0xe8   : > { %v325_v11 = vmax.f32 %v321_v8, 0.0 }
  0xe9   : > { %v324_v12 = vmax.f32 %v316_v10, 0.0 }
  0xea   : > { %v327_v14 = vmul.f32 %v325_v11, %v325_v11 }
  0xeb   : > { %v326_v13 = vmul.f32 %v324_v12, %v324_v12 }
  0xed   : > { %540 = vmatprep.mubr.msk.f32.mxu1 %vm337_vm2, %v326_v13 }
  0xee   : > { %541 = vmatmul.mubr.msk.f32.vlgmr.msra.gmra.mrb[0].mxu1 %vm337_vm2, %v327_v14 }
 0x1c1   : > { %v542_v16 = vpop.f32.mrb[0].mxu1 }
 0x1c2   : > { %v410_v17 = vpop.f32.mrb[1].mxu1  ;;  %v416_v19 = vadd.f32 %v542_v16, %v519_v15 }
 0x1c3   : > { %v411_v18 = vadd.f32 %v519_v15, %v410_v17 }
 0x1c5   : > { %419 = vmax.xlane.f32.xlu0 %v411_v18 }
 0x1c9   : > { %421 = vmax.xlane.f32.xlu0 %v416_v19 }
 0x252   : > { %v420_v20 = vpop.xlane.xlu0 %419 }
 0x253   : > { %v423_v21 = vsub.f32 %v411_v18, %v420_v20 }
 0x255   : > { %v425_v22 = vmul.f32 1.442695, %v423_v21 }
 0x256   : > { %v422_v23 = vpop.xlane.xlu0 %421 }
 0x257   : > { %556 = vpow2.f32 %v425_v22  ;;  %v424_v24 = vsub.f32 %v416_v19, %v422_v23 }
 0x259   : > { %v427_v25 = vmul.f32 1.442695, %v424_v24 }
 0x25b   : > { %558 = vpow2.f32 %v427_v25 }
 0x261   : > { %v557_v26 = vpop.eup %556 }
 0x262   : > { %429 = vadd.xlane.f32.xlu1 %v557_v26 }
 0x265   : > { %v559_v27 = vpop.eup %558 }
 0x266   : > { %431 = vadd.xlane.f32.xlu1 %v559_v27 }
 0x2ef   : > { %v430_v28 = vpop.xlane.xlu1 %429 }
 0x2f0   : > { %560 = vrcp.f32 %v430_v28 }
 0x2f3   : > { %v432_v29 = vpop.xlane.xlu1 %431 }
 0x2f4   : > { %562 = vrcp.f32 %v432_v29 }
 0x2fa   : > { %v561_v30 = vpop.eup %560 }
 0x2fb   : > { %v434_v31 = vmul.f32 %v561_v30, %v557_v26 }
 0x2fd   : > { %439 = vrot.lane.b32.xlu0 %v434_v31, %s572_s10 }
 0x2fe   : > { %v563_v32 = vpop.eup %562 }
 0x2ff   : > { %v436_v33 = vmul.f32 %v563_v32, %v559_v27 }
 0x301   : > { %441 = vrot.lane.b32.xlu1 %v436_v33, %s572_s10 }
 0x36f   : > { %v440_v34 = vpop.permute.xlu0 %439 }
 0x370   : > { %v446_v35 = vsel %vm445_vm3, %v411_v18, %v440_v34 }
 0x371   : > { %448 = vst [vmem:[%s226_s13] sm:$0xff] %v446_v35 }
 0x373   : > { %v442_v36 = vpop.permute.xlu1 %441 }
 0x374   : > { %v447_v37 = vsel %vm445_vm3, %v416_v19, %v442_v36 }
 0x375   : > { %449 = vst [vmem:[%s226_s13 + $0x8] sm:$0xff] %v447_v37 }
 0x376 PF: > { %s15_s18 = sadd.s32 1, %s570_s18  }
 0x377   : > { %p12_p4 = scmp.ge.s32.totalorder %s15_s18, 6  }
 0x379   :  { %14 = sbr.rel (!%p12_p4) target bundleno = 1 (0x1), region = 70 }

</bundles_post_ra>
